<compile_context>
chip_gen: v7x
topology: tpu7x:2x2x1
jax: 0.10.0
libtpu: 0.0.40
codegen_flags: <defaults>
</compile_context>

<pallas_src>
import math

import jax
import jax.numpy as jnp
from jax.experimental import pallas as pl
from jax.experimental.pallas import tpu as pltpu


_C1 = math.sqrt(2.0 / math.pi)      # sqrt(2/pi)
_C2 = 0.044715 * _C1                # folded: sqrt(2/pi) * 0.044715


def _gelu_kernel(x_ref, o_ref):
    # gelu(x) = 0.5*x*(1 + tanh(sqrt(2/pi)*(x + 0.044715*x^3)))
    # VALU-lean form: inner = x*(C1 + C2*x^2); out = 0.5*x + 0.5*x*tanh(inner)
    xf = x_ref[...].astype(jnp.float32)
    t = xf * xf
    inner = xf * (_C1 + _C2 * t)
    half = 0.5 * xf
    o_ref[...] = (half + half * jnp.tanh(inner)).astype(o_ref.dtype)


def _vmem_capacity_bytes() -> int:
    try:
        info = pltpu.get_tpu_info()
        return int(getattr(info, "vmem_capacity_bytes", 128 * 1024 * 1024))
    except Exception:
        return 128 * 1024 * 1024


def gelu_pallas(x: jax.Array, *, target_block_bytes: int | None = None) -> jax.Array:
    """Elementwise tanh-GELU matching the PyTorch module's forward."""
    orig_shape = x.shape
    dtype = x.dtype
    itemsize = jnp.dtype(dtype).itemsize
    total = x.size
    if total == 0:
        return x

    # Fallback for awkward element counts: one full-array block (exempt from
    # the (8,128) divisibility rule). Fine for the small tensors this hits.
    if total % 128 != 0:
        x2 = x.reshape(1, total)
        out2 = pl.pallas_call(
            _gelu_kernel,
            out_shape=jax.ShapeDtypeStruct((1, total), dtype),
            grid=(1,),
            in_specs=[pl.BlockSpec((1, total), lambda i: (0, 0))],
            out_specs=pl.BlockSpec((1, total), lambda i: (0, 0)),
        )(x2)
        return out2.reshape(orig_shape)

    vmem_cap = _vmem_capacity_bytes()
    if target_block_bytes is None:
        # v7x: 64 MiB VMEM/TC -> ~4 MiB blocks; v5e/v6e: 128 MiB -> ~8 MiB blocks.
        target_block_bytes = (
            4 * 1024 * 1024 if vmem_cap <= 64 * 1024 * 1024 else 8 * 1024 * 1024
        )
    # Explicit scoped-VMEM limit: enough for 4 double-buffered in+out blocks
    # plus headroom, never more than half of physical VMEM.
    vmem_limit = min(64 * 1024 * 1024, vmem_cap // 2)

    # Widest lane-dense last dim that divides the element count (unmasked vst,
    # fewer sublane-loop trips per block).
    lanes = 128
    for cand in (8192, 4096, 2048, 1024, 512, 256, 128):
        if total % cand == 0:
            lanes = cand
            break
    rows = total // lanes
    x2 = x.reshape(rows, lanes)  # metadata-only reshape, no HBM copy

    # Rows per block: aim at target_block_bytes, sublane-aligned for dtype.
    sublane = {4: 8, 2: 16, 1: 32}.get(itemsize, 8)
    tile_rows = (target_block_bytes // (lanes * itemsize)) // sublane * sublane
    tile_rows = max(sublane, tile_rows)

    # Guarantee >= 2 grid steps on arrays > ~4 MiB so the "parallel" axis can
    # split across both TensorCores on v7x (free on 1-TC chips).
    array_bytes = total * itemsize
    if array_bytes > 4 * 1024 * 1024 and rows >= 2 * sublane:
        half_rows = (rows // 2) // sublane * sublane
        tile_rows = min(tile_rows, max(sublane, half_rows))

    if tile_rows >= rows:
        # Single block covering the whole array (exempt from (8,128) rule).
        tile_rows = rows
        grid = 1
    else:
        # Partial last block (if any) is masked by Pallas on store.
        grid = pl.cdiv(rows, tile_rows)

    cost = pl.CostEstimate(
        flops=8 * total,
        transcendentals=total,
        bytes_accessed=2 * total * itemsize,
    )

    out2 = pl.pallas_call(
        _gelu_kernel,
        out_shape=jax.ShapeDtypeStruct((rows, lanes), dtype),
        grid_spec=pltpu.PrefetchScalarGridSpec(
            num_scalar_prefetch=0,
            grid=(grid,),
            in_specs=[pl.BlockSpec((tile_rows, lanes), lambda i: (i, 0))],
            out_specs=pl.BlockSpec((tile_rows, lanes), lambda i: (i, 0)),
        ),
        compiler_params=pltpu.CompilerParams(
            dimension_semantics=("parallel",),
            vmem_limit_bytes=vmem_limit,
        ),
        cost_estimate=cost,
    )(x2)

    return out2.reshape(orig_shape)


def gelu_reference(x: jax.Array) -> jax.Array:
    xf = x.astype(jnp.float32)
    cdf = 0.5 * (1.0 + jnp.tanh(_C1 * (xf + 0.044715 * jnp.power(xf, 3))))
    return (xf * cdf).astype(x.dtype)


if __name__ == "__main__":
    key = jax.random.PRNGKey(0)

    # Primary check: small NCHW-style activation tensor (matches module usage).
    x = jax.random.normal(key, (2, 4, 16, 32), dtype=jnp.float32)
    out = jax.block_until_ready(gelu_pallas(x))
    ref = gelu_reference(x)
    assert out.shape == x.shape and out.dtype == x.dtype
    assert jnp.allclose(out, ref, atol=1e-5, rtol=1e-5)

    # Multi-block path (>4 MiB -> at least 2 grid steps / 2-TC split on v7x).
    key2 = jax.random.PRNGKey(1)
    x_big = jax.random.normal(key2, (8, 16, 128, 128), dtype=jnp.float32)
    out_big = jax.block_until_ready(gelu_pallas(x_big))
    assert jnp.allclose(out_big, gelu_reference(x_big), atol=1e-5, rtol=1e-5)

    # bf16 storage / f32 internal compute path.
    x_bf = x.astype(jnp.bfloat16)
    out_bf = jax.block_until_ready(gelu_pallas(x_bf))
    ref_bf = gelu_reference(x).astype(jnp.bfloat16)
    assert out_bf.dtype == jnp.bfloat16
    assert jnp.allclose(
        out_bf.astype(jnp.float32), ref_bf.astype(jnp.float32), atol=2e-2, rtol=2e-2
    )

    # Awkward element count (not a multiple of 128) -> full-array-block fallback.
    key3 = jax.random.PRNGKey(2)
    x_odd = jax.random.normal(key3, (2, 3, 5, 7), dtype=jnp.float32)
    out_odd = jax.block_until_ready(gelu_pallas(x_odd))
    assert jnp.allclose(out_odd, gelu_reference(x_odd), atol=1e-5, rtol=1e-5)

    print("KERNEL_OK")
</pallas_src>

<mosaic_0001>
module attributes {stable_mosaic.version = 11 : i64} {
  func.func @_gelu_kernel(%arg0: i32, %arg1: memref<1x4096xf32, #tpu.memory_space<vmem>>, %arg2: memref<1x4096xf32, #tpu.memory_space<vmem>>) attributes {dimension_semantics = [#tpu.dimension_semantics<parallel>], iteration_bounds = array<i64: 1>, scalar_prefetch = 0 : i64, scratch_operands = 0 : i64, tpu.core_type = #tpu.core_type<tc>, window_params = [{transform_indices = @transform_0, window_bounds = array<i64: 1, 4096>}, {transform_indices = @transform_1, window_bounds = array<i64: 1, 4096>}]} {
    %c0 = arith.constant 0 : index
    %c0_0 = arith.constant 0 : index
    %0 = vector.load %arg1[%c0, %c0_0] : memref<1x4096xf32, #tpu.memory_space<vmem>>, vector<1x4096xf32>
    %1 = arith.mulf %0, %0 : vector<1x4096xf32>
    %cst = arith.constant 0.0356774069 : f32
    %2 = vector.broadcast %cst : f32 to vector<1x4096xf32>
    %3 = arith.mulf %2, %1 : vector<1x4096xf32>
    %cst_1 = arith.constant 0.797884583 : f32
    %4 = vector.broadcast %cst_1 : f32 to vector<1x4096xf32>
    %5 = arith.addf %4, %3 : vector<1x4096xf32>
    %6 = arith.mulf %0, %5 : vector<1x4096xf32>
    %cst_2 = arith.constant 5.000000e-01 : f32
    %7 = vector.broadcast %cst_2 : f32 to vector<1x4096xf32>
    %8 = arith.mulf %7, %0 : vector<1x4096xf32>
    %9 = math.tanh %6 : vector<1x4096xf32>
    %10 = arith.mulf %8, %9 : vector<1x4096xf32>
    %11 = arith.addf %8, %10 : vector<1x4096xf32>
    %c0_3 = arith.constant 0 : index
    %c0_4 = arith.constant 0 : index
    %12 = vector.load %arg2[%c0_3, %c0_4] : memref<1x4096xf32, #tpu.memory_space<vmem>>, vector<1x4096xf32>
    tpu.vector_store %arg2[%c0_3, %c0_4], %11 {strides = array<i32>} : memref<1x4096xf32, #tpu.memory_space<vmem>>, vector<1x4096xf32>,
    return
  }
  func.func @transform_0(%arg0: i32) -> (i32, i32) {
    %c0_i32 = arith.constant 0 : i32
    %c0_i32_0 = arith.constant 0 : i32
    return %arg0, %c0_i32 : i32, i32
  }
  func.func @transform_1(%arg0: i32) -> (i32, i32) {
    %c0_i32 = arith.constant 0 : i32
    %c0_i32_0 = arith.constant 0 : i32
    return %arg0, %c0_i32 : i32, i32
  }
}

</mosaic_0001>

<bundles_post_ra>
// kernel: tpu_custom_call.1
= control target key start
LH: loop header
LB: loop body
LE: loop exit
PB: predicated region body
PF: predicated region fallthrough
CT: control target
= control target key end

     0   :  { %6 = vsyncpa [#allocation3], 0  ;;  %s170_s0 = inlined_call_operand.hbm [shape: f32[1,4096], index: 0, kind: input, shape index: {}]   ;;  %s171_s1 = inlined_call_operand.hbm [shape: f32[1,4096], index: 1, kind: output, shape index: {}]  }
   0x1   :  { %7 = vsyncpa [#allocation4], 0  ;;  %s134_s6 = smov [#allocation2]   ;;  %s86_s10 = scalar_lea.hbm %s170_s0, 512 }
   0x2   :  { %s14_s7 = sshll.u32 %s134_s6, 4  ;;  %p87_p0 = scmp.ne.s32.totalorder %s170_s0, %s86_s10  ;;  %s15_s7 = int_to_ptr.vmem [resolvable:$true] %s14_s7 }
   0x3   :  { %p90_p1 = scmp.lt.u32.totalorder %s86_s10, %s170_s0 }
   0x5   :  { %p92_p2 = pnand %p90_p1, %p87_p0 }
   0x7   :  { %95 = shalt.err (!%p92_p2)
}
   0x8   :  { %s96_s15 = scalar_lea.vmem %s15_s7, 512  ;;  %p101_p4 = scmp.lt.s32.totalorder %s15_s7, %s15_s7 }
   0x9   :  { %p97_p3 = scmp.ne.s32.totalorder %s15_s7, %s96_s15  ;;  %p102_p5 = scmp.lt.s32.totalorder %s96_s15, %s96_s15 }
   0xb   :  { %p103_p6 = por %p102_p5, %p101_p4 }
   0xd   :  { %p104_p7 = pnand %p103_p6, %p97_p3 }
   0xf   :  { %107 = shalt.err (!%p104_p7)
}
  0x10   :  { %17 = dma.hbm_to_vmem [thread:$0]  %s170_s0, 512, %s15_s7, [#allocation3]  }
  0x11   :  { %130 = dma.done.wait [#allocation3], 512  }
  0x12   :  { %131 = vsyncadd [#allocation3], 4294966784  ;;  %v21_v0 = vld [vmem:[#allocation2] sm:$0xff]  ;;  %v22_v1 = vld [vmem:[#allocation2 + $0x8] sm:$0xff]  ;;  %s135_s0 = smov [#allocation5]  }
  0x13   :  { %v23_v2 = vld [vmem:[#allocation2 + $0x10] sm:$0xff]  ;;  %v25_v3 = vmul.f32 %v21_v0, %v21_v0  ;;  %v26_v4 = vmul.f32 %v22_v1, %v22_v1  ;;  %v24_v5 = vld [vmem:[#allocation2 + $0x18] sm:$0xff]  ;;  %v41_v20 = vmul.f32 0.5, %v21_v0  ;;  %v42_v21 = vmul.f32 0.5, %v22_v1  ;;  %s67_s18 = sshll.u32 %s135_s0, 4  ;;  %s68_s18 = int_to_ptr.vmem [resolvable:$true] %s67_s18 }
  0x14   :  { %v27_v6 = vmul.f32 %v23_v2, %v23_v2  ;;  %v28_v7 = vmul.f32 %v24_v5, %v24_v5  ;;  %v43_v22 = vmul.f32 0.5, %v23_v2  ;;  %v44_v24 = vmul.f32 0.5, %v24_v5  ;;  %s108_s19 = scalar_lea.vmem %s68_s18, 512  ;;  %p113_p9 = scmp.lt.s32.totalorder %s68_s18, %s68_s18 }
  0x15   :  { %v29_v8 = vmul.f32 0.035677407, %v25_v3  ;;  %v30_v9 = vmul.f32 0.035677407, %v26_v4  ;;  %p109_p8 = scmp.ne.s32.totalorder %s68_s18, %s108_s19  ;;  %p114_p10 = scmp.lt.s32.totalorder %s108_s19, %s108_s19 }
  0x16   :  { %v31_v10 = vmul.f32 0.035677407, %v27_v6  ;;  %v32_v11 = vmul.f32 0.035677407, %v28_v7 }
  0x17   :  { %v33_v12 = vadd.f32 0.7978846, %v29_v8  ;;  %v34_v13 = vadd.f32 0.7978846, %v30_v9  ;;  %p115_p11 = por %p114_p10, %p113_p9 }
  0x18   :  { %v35_v14 = vadd.f32 0.7978846, %v31_v10  ;;  %v36_v15 = vadd.f32 0.7978846, %v32_v11 }
  0x19   :  { %v37_v16 = vmul.f32 %v33_v12, %v21_v0  ;;  %v38_v17 = vmul.f32 %v34_v13, %v22_v1  ;;  %p116_p12 = pnand %p115_p11, %p109_p8 }
  0x1a   :  { %v39_v18 = vmul.f32 %v35_v14, %v23_v2  ;;  %v40_v19 = vmul.f32 %v36_v15, %v24_v5 }
  0x1b   :  { %78 = vtanh.f32 %v37_v16 }
  0x1c   :  { %80 = vtanh.f32 %v38_v17 }
  0x1d   :  { %82 = vtanh.f32 %v39_v18 }
  0x1e   :  { %84 = vtanh.f32 %v40_v19 }
  0x25   :  { %v79_v23 = vpop.eup %78 }
  0x26   :  { %v81_v25 = vpop.eup %80  ;;  %v49_v26 = vmul.f32 %v79_v23, %v41_v20 }
  0x27   :  { %v83_v27 = vpop.eup %82  ;;  %v50_v28 = vmul.f32 %v81_v25, %v42_v21 }
  0x28   :  { %v85_v29 = vpop.eup %84  ;;  %v53_v30 = vadd.f32 %v49_v26, %v41_v20  ;;  %v51_v31 = vmul.f32 %v83_v27, %v43_v22 }
  0x29   :  { %v54_v32 = vadd.f32 %v50_v28, %v42_v21  ;;  %v52_v33 = vmul.f32 %v85_v29, %v44_v24 }
  0x2a   :  { %57 = vst [vmem:[#allocation5] sm:$0xff] %v53_v30  ;;  %v55_v34 = vadd.f32 %v51_v31, %v43_v22 }
  0x2b   :  { %58 = vst [vmem:[#allocation5 + $0x8] sm:$0xff] %v54_v32  ;;  %v56_v35 = vadd.f32 %v52_v33, %v44_v24 }
  0x2c   :  { %59 = vst [vmem:[#allocation5 + $0x10] sm:$0xff] %v55_v34 }
  0x2d   :  { %60 = vst [vmem:[#allocation5 + $0x18] sm:$0xff] %v56_v35 }
  0x2e   :  { %119 = shalt.err (!%p116_p12)
}
  0x2f   :  { %s120_s22 = scalar_lea.hbm %s171_s1, 512 }
  0x30   :  { %p121_p13 = scmp.ne.s32.totalorder %s171_s1, %s120_s22  ;;  %p124_p0 = scmp.lt.u32.totalorder %s120_s22, %s171_s1 }
  0x32   :  { %p126_p1 = pnand %p124_p0, %p121_p13 }
  0x34   :  { %129 = shalt.err (!%p126_p1)
}
  0x35   :  { %70 = dma.vmem_to_hbm [thread:$0]  %s68_s18, 512, %s171_s1, [#allocation4]  }
  0x36   :  { %132 = dma.done.wait [#allocation4], 512  }
  0x37   :  { %133 = vsyncadd [#allocation4], 4294966784 }
  0x38   :  { %74 = vsyncpa [#allocation3], 1 }
  0x39   :  { %75 = vsyncpa [#allocation4], 1 }

</bundles_post_ra>
